<compile_context>
chip_gen: v6e
topology: v6e:2x2x1
jax: 0.10.0
libtpu: 0.0.40
codegen_flags: <defaults>
</compile_context>

<pallas_src>
import jax
import jax.numpy as jnp
from jax.experimental import pallas as pl
from jax.experimental.pallas import tpu as pltpu


# ---------------------------------------------------------------------------
# Kernels
# ---------------------------------------------------------------------------

def _gemv_rowtile_kernel(x_ref, w_ref, o_ref):
    """General path.  x_ref: (TM, F), w_ref: (1, F), o_ref: (TM, 1).

    VPU broadcast-multiply + lane (XLU) reduction; no MXU, no transpose.
    """
    x = x_ref[...].astype(jnp.float32)
    w = w_ref[...].astype(jnp.float32)          # (1, F) broadcasts over sublanes
    o_ref[...] = jnp.sum(x * w, axis=-1, keepdims=True).astype(o_ref.dtype)


def _scale_lanedense_kernel(x_ref, w_ref, o_ref):
    """in_features == 1 path.  x_ref/o_ref: (TM, 512) VMEM, w_ref: (1,1) SMEM."""
    w = w_ref[0, 0]
    o_ref[...] = (x_ref[...].astype(jnp.float32) * w).astype(o_ref.dtype)


# ---------------------------------------------------------------------------
# Wrappers
# ---------------------------------------------------------------------------

_LANES = 512           # lane-dense slab width for the scalar path (mult. of 128)
_MAX_ROW_TILE = 1024   # max rows per block (multiple of 8)


def _round_up(v: int, m: int) -> int:
    return ((v + m - 1) // m) * m


def _pick_row_tile(n: int, f: int, itemsize: int) -> int:
    # Keep each (TM, F) x buffer <= ~8 MiB so double buffering (2 x-buffers)
    # plus the resident weight stays far below the 32 MiB default scoped VMEM
    # on v7x (and is trivially fine on v5e/v6e's 128 MiB).
    per_buffer_budget = 8 * 1024 * 1024
    tm = per_buffer_budget // max(1, f * itemsize)
    tm = min(_MAX_ROW_TILE, tm)
    tm = max(8, (tm // 8) * 8)
    tm = min(tm, _round_up(n, 8))
    return max(8, (tm // 8) * 8)


def _forward_general(x: jax.Array, weight: jax.Array) -> jax.Array:
    """Tiled, pipelined GEMV over the batch dimension."""
    n, f = x.shape
    tm = _pick_row_tile(n, f, x.dtype.itemsize)
    n_pad = _round_up(n, tm)
    if n_pad != n:
        x = jnp.pad(x, ((0, n_pad - n), (0, 0)))   # zero tail rows -> zero outputs
    # TODO(synk): for in_features so large that even an (8, F) tile exceeds VMEM,
    # add a second "arbitrary" grid axis over F with an f32 accumulator scratch.
    out = pl.pallas_call(
        _gemv_rowtile_kernel,
        out_shape=jax.ShapeDtypeStruct((n_pad, 1), x.dtype),
        grid=(n_pad // tm,),
        in_specs=[
            pl.BlockSpec((tm, f), lambda i: (i, 0)),
            pl.BlockSpec((1, f), lambda i: (0, 0)),   # weight resident across grid
        ],
        out_specs=pl.BlockSpec((tm, 1), lambda i: (i, 0)),
        compiler_params=pltpu.CompilerParams(
            dimension_semantics=("parallel",)),
    )(x, weight)
    return out[:n]


def _forward_scalar(x: jax.Array, weight: jax.Array) -> jax.Array:
    """in_features == 1: y = x * w[0, 0], computed on a lane-dense slab."""
    n = x.shape[0]
    r0 = pl.cdiv(n, _LANES)
    tm = min(_MAX_ROW_TILE, _round_up(r0, 8))
    r = _round_up(r0, tm)
    n_pad = r * _LANES

    x_flat = x.reshape(n)
    if n_pad != n:
        x_flat = jnp.pad(x_flat, (0, n_pad - n))
    x2d = x_flat.reshape(r, _LANES)

    out = pl.pallas_call(
        _scale_lanedense_kernel,
        out_shape=jax.ShapeDtypeStruct((r, _LANES), x.dtype),
        grid=(r // tm,),
        in_specs=[
            pl.BlockSpec((tm, _LANES), lambda i: (i, 0)),
            pl.BlockSpec(memory_space=pltpu.MemorySpace.SMEM),  # (1,1) scalar weight
        ],
        out_specs=pl.BlockSpec((tm, _LANES), lambda i: (i, 0)),
        compiler_params=pltpu.CompilerParams(
            dimension_semantics=("parallel",)),
    )(x2d, weight)
    return out.reshape(n_pad)[:n].reshape(n, 1)


def coefficient_net_forward(x: jax.Array, weight: jax.Array) -> jax.Array:
    """x: (N, F), weight: (1, F)  ->  (N, 1)   (== PyTorch x @ W^T, no bias)."""
    n, f = x.shape
    assert weight.shape == (1, f)
    if f == 1:
        return _forward_scalar(x, weight)
    return _forward_general(x, weight)


def make_coefficient_net_params(in_features: int = 1) -> jax.Array:
    # Deterministic init, matching `self.fc1.weight.data.fill_(0.01)`.
    return jnp.full((1, in_features), 0.01, dtype=jnp.float32)


# ---------------------------------------------------------------------------
# Self-test
# ---------------------------------------------------------------------------

if __name__ == "__main__":
    key = jax.random.PRNGKey(0)
    k1, k2 = jax.random.split(key)

    # Module default: in_features = 1  (lane-dense scalar-multiply path).
    batch, in_features = 8, 1
    x1 = jax.random.normal(k1, (batch, in_features), dtype=jnp.float32)
    w1 = make_coefficient_net_params(in_features)
    y1 = jax.block_until_ready(coefficient_net_forward(x1, w1))
    assert y1.shape == (batch, 1)
    assert jnp.allclose(y1, x1 @ w1.T, atol=1e-6, rtol=1e-6)

    # General in_features path (tiled, pipelined GEMV) with a ragged batch.
    batch2, in_features2 = 20, 32
    x2 = jax.random.normal(k2, (batch2, in_features2), dtype=jnp.float32)
    w2 = make_coefficient_net_params(in_features2)
    y2 = jax.block_until_ready(coefficient_net_forward(x2, w2))
    assert y2.shape == (batch2, 1)
    assert jnp.allclose(y2, x2 @ w2.T, atol=1e-5, rtol=1e-5)

    print("KERNEL_OK")
</pallas_src>

<mosaic_0001>
module attributes {stable_mosaic.version = 11 : i64} {
  func.func @_scale_lanedense_kernel(%arg0: i32, %arg1: memref<8x512xf32, #tpu.memory_space<vmem>>, %arg2: memref<1x1xf32, #tpu.memory_space<smem>>, %arg3: memref<8x512xf32, #tpu.memory_space<vmem>>) attributes {dimension_semantics = [#tpu.dimension_semantics<parallel>], iteration_bounds = array<i64: 1>, scalar_prefetch = 0 : i64, scratch_operands = 0 : i64, tpu.core_type = #tpu.core_type<tc>, window_params = [{transform_indices = @transform_0, window_bounds = array<i64: 8, 512>}, {transform_indices = @transform_1, window_bounds = array<i64: 1, 1>}, {transform_indices = @transform_2, window_bounds = array<i64: 8, 512>}]} {
    %c0 = arith.constant 0 : index
    %c0_0 = arith.constant 0 : index
    %0 = memref.load %arg2[%c0, %c0_0] : memref<1x1xf32, #tpu.memory_space<smem>>
    %c0_1 = arith.constant 0 : index
    %c0_2 = arith.constant 0 : index
    %1 = vector.load %arg1[%c0_1, %c0_2] : memref<8x512xf32, #tpu.memory_space<vmem>>, vector<8x512xf32>
    %2 = vector.broadcast %0 : f32 to vector<8x512xf32>
    %3 = arith.mulf %1, %2 : vector<8x512xf32>
    %c0_3 = arith.constant 0 : index
    %c0_4 = arith.constant 0 : index
    %4 = vector.load %arg3[%c0_3, %c0_4] : memref<8x512xf32, #tpu.memory_space<vmem>>, vector<8x512xf32>
    tpu.vector_store %arg3[%c0_3, %c0_4], %3 {strides = array<i32>} : memref<8x512xf32, #tpu.memory_space<vmem>>, vector<8x512xf32>,
    return
  }
  func.func @transform_0(%arg0: i32) -> (i32, i32) {
    %c0_i32 = arith.constant 0 : i32
    %c0_i32_0 = arith.constant 0 : i32
    return %arg0, %c0_i32 : i32, i32
  }
  func.func @transform_1(%arg0: i32) -> (i32, i32) {
    %c0_i32 = arith.constant 0 : i32
    %c0_i32_0 = arith.constant 0 : i32
    %c0_i32_1 = arith.constant 0 : i32
    return %c0_i32, %c0_i32_0 : i32, i32
  }
  func.func @transform_2(%arg0: i32) -> (i32, i32) {
    %c0_i32 = arith.constant 0 : i32
    %c0_i32_0 = arith.constant 0 : i32
    return %arg0, %c0_i32 : i32, i32
  }
}

</mosaic_0001>

<bundles_post_ra>
// kernel: tpu_custom_call.1
= control target key start
LH: loop header
LB: loop body
LE: loop exit
PB: predicated region body
PF: predicated region fallthrough
CT: control target
= control target key end

     0   :  { %8 = vsyncpa [#allocation4], 0  ;;  %s126_s0 = inlined_call_operand.hbm [shape: f32[8,512], index: 0, kind: input, shape index: {}]   ;;  %s127_s1 = inlined_call_operand.<no memory space> [shape: f32[1,1], index: 1, kind: input, shape index: {}]   ;;  %s128_s2 = inlined_call_operand.hbm [shape: f32[8,512], index: 2, kind: output, shape index: {}]  }
   0x1   :  { %9 = vsyncpa [#allocation5], 0  ;;  %s100_s9 = smov [#allocation3]  }
   0x2   :  { %s16_s10 = sshll.u32 %s100_s9, 4  ;;  %s17_s10 = int_to_ptr.vmem [resolvable:$true] %s16_s10 }
   0x3   :  { %s64_s11 = scalar_lea.vmem %s17_s10, 512  ;;  %p69_p1 = scmp.lt.s32.totalorder %s17_s10, %s17_s10 }
   0x4   :  { %p65_p0 = scmp.ne.s32.totalorder %s17_s10, %s64_s11  ;;  %p70_p2 = scmp.lt.s32.totalorder %s64_s11, %s64_s11 }
   0x6   :  { %p71_p3 = por %p70_p2, %p69_p1 }
   0x8   :  { %p72_p4 = pnand %p71_p3, %p65_p0 }
   0xa   :  { %75 = shalt.err (!%p72_p4)
}
   0xb   :  { %19 = dma.hbm_to_vmem [thread:$0]  %s126_s0, 512, %s17_s10, [#allocation4]  }
   0xc   :  { %96 = dma.done.wait [#allocation4], 512  }
   0xd   :  { %97 = vsyncadd [#allocation4], 4294966784  ;;  %v30_v0 = vstv %s127_s1  ;;  %s101_s16 = smov [#allocation6]   ;;  %v26_v1 = vld [vmem:[#allocation3] sm:$0xff]  ;;  %v27_v2 = vld [vmem:[#allocation3 + $0x8] sm:$0xff] }
   0xe   :  { %s45_s17 = sshll.u32 %s101_s16, 4  ;;  %v28_v3 = vld [vmem:[#allocation3 + $0x10] sm:$0xff]  ;;  %v31_v4 = vmul.f32 %v30_v0, %v26_v1  ;;  %v32_v5 = vmul.f32 %v30_v0, %v27_v2  ;;  %v29_v7 = vld [vmem:[#allocation3 + $0x18] sm:$0xff]  ;;  %s46_s17 = int_to_ptr.vmem [resolvable:$true] %s45_s17 }
   0xf   :  { %v33_v6 = vmul.f32 %v30_v0, %v28_v3  ;;  %v34_v8 = vmul.f32 %v30_v0, %v29_v7  ;;  %s76_s0 = scalar_lea.vmem %s46_s17, 512  ;;  %p81_p6 = scmp.lt.s32.totalorder %s46_s17, %s46_s17 }
  0x10   :  { %35 = vst [vmem:[#allocation6] sm:$0xff] %v31_v4  ;;  %36 = vst [vmem:[#allocation6 + $0x8] sm:$0xff] %v32_v5  ;;  %p77_p5 = scmp.ne.s32.totalorder %s46_s17, %s76_s0  ;;  %p82_p7 = scmp.lt.s32.totalorder %s76_s0, %s76_s0 }
  0x11   :  { %37 = vst [vmem:[#allocation6 + $0x10] sm:$0xff] %v33_v6  ;;  %38 = vst [vmem:[#allocation6 + $0x18] sm:$0xff] %v34_v8 }
  0x12   :  { %p83_p8 = por %p82_p7, %p81_p6 }
  0x14   :  { %p84_p9 = pnand %p83_p8, %p77_p5 }
  0x16   :  { %87 = shalt.err (!%p84_p9)
}
  0x17   :  { %48 = dma.vmem_to_hbm [thread:$0]  %s46_s17, 512, %s128_s2, [#allocation5]  }
  0x18   :  { %98 = dma.done.wait [#allocation5], 512  }
  0x19   :  { %99 = vsyncadd [#allocation5], 4294966784 }
  0x1a   :  { %52 = vsyncpa [#allocation4], 1 }
  0x1b   :  { %53 = vsyncpa [#allocation5], 1 }

</bundles_post_ra>
